<compile_context>
chip_gen: v5e
topology: v5e:2x2
jax: 0.10.0
libtpu: 0.0.40
codegen_flags: <defaults>
</compile_context>

<pallas_src>
import jax
import jax.numpy as jnp
from jax.experimental import pallas as pl
from jax.experimental.pallas import tpu as pltpu

_IN_FEATURES = 32
_PACK = 4                         # original rows packed per 128-lane register row
_LANES = _PACK * _IN_FEATURES     # 128


def _disc_vae_kernel(z_ref, w_ref, b_ref, out_ref):
    # z_ref:   (tile_p, 128) packed batch tile (4 original rows per packed row),
    #          double-buffered by the Pallas pipeline.
    # w_ref:   (128, 4) block-diagonal fused weight, VMEM-resident (constant map).
    # b_ref:   (1,) fused bias scalar in SMEM.
    # out_ref: (tile_p, 4) f32.
    logits = jnp.dot(z_ref[...], w_ref[...], preferred_element_type=jnp.float32)
    logits = logits + b_ref[0]
    # sigmoid = 1 / (1 + exp(-x)): exp on EUP, approx reciprocal also on EUP
    # (both off the VALU/store critical slots); kept in f32.
    out_ref[...] = pl.reciprocal(1.0 + jnp.exp(-logits), approx=True).astype(out_ref.dtype)


def _round_up(x, m):
    return (x + m - 1) // m * m


def discriminator_vae_forward(z, w1, b1, w2, b2, *, tile_b=None):
    """sigmoid(fc2(fc1(z))) with fc1: Linear(32->64), fc2: Linear(64->1).

    z: (B, 32) f32 or bf16 -> (B, 1) f32.  For large (HBM-bound) batches, cast z
    to bf16 ONCE upstream: it halves the dominant HBM read; accumulation and the
    sigmoid epilogue stay f32.  Weights are stored (in, out), i.e. the transposed
    nn.Linear weights, so the math is sigmoid((z @ w1 + b1) @ w2 + b2).
    """
    B, F = z.shape
    assert F == _IN_FEATURES and w1.shape == (32, 64) and b1.shape == (64,)
    assert w2.shape == (64, 1) and b2.shape == (1,)

    # --- fold fc2∘fc1 into one affine map (exact: no activation in between) ---
    w1f, w2f = w1.astype(jnp.float32), w2.astype(jnp.float32)
    w_fused = w1f @ w2f                                                    # (32, 1) f32
    b_fused = (b1.astype(jnp.float32) @ w2f + b2.astype(jnp.float32)).reshape(1)  # (1,) f32
    # Lane-dense packing: (128, 4) block-diagonal weight, column j holds w_fused
    # in rows 32j..32j+31.  (bf16 z -> bf16 weight; acc is f32 either way.)
    w_packed = jnp.kron(jnp.eye(_PACK, dtype=jnp.float32), w_fused).astype(z.dtype)  # (128, 4)

    # Split off a <4-row tail so the packed reshape stays a free bitcast (no pad copy).
    b_main = (B // _PACK) * _PACK
    pb = b_main // _PACK                     # packed rows

    outs = []
    if pb > 0:
        zp = z[:b_main].reshape(pb, _LANES)  # contiguous reshape: free when B % 4 == 0

        # Batch tile in ORIGINAL rows.  Defaults: 32K f32 / 64K bf16 rows
        # -> 4 MiB per z tile, 8 MiB double-buffered (fits v5e 16 MiB scoped
        #    default, v6e 32 MiB, v7x 64 MiB physical with headroom).
        if tile_b is None:
            tile_b = 65536 if z.dtype == jnp.bfloat16 else 32768
        tile_p = max(16, _round_up(tile_b // _PACK, 16))
        # v7x megacore: keep >= ~8 grid steps so both TensorCores get work.
        tile_p = min(tile_p, max(16, _round_up(pl.cdiv(pb, 8), 16)))

        # Partial trailing block instead of jnp.pad: OOB rows only produce
        # output rows that are never real outputs; OOB writes are masked.
        grid = (pl.cdiv(pb, tile_p),)

        itemsize = jnp.dtype(z.dtype).itemsize
        vmem_need = (2 * tile_p * _LANES * itemsize       # double-buffered z tiles
                     + 2 * tile_p * _PACK * 4             # double-buffered out tiles
                     + _LANES * _PACK * itemsize          # resident fused weight
                     + (1 << 16))                         # slack
        vmem_limit = min(48 << 20, max(16 << 20, (vmem_need * 3) // 2))

        y_packed = pl.pallas_call(
            _disc_vae_kernel,
            out_shape=jax.ShapeDtypeStruct((pb, _PACK), jnp.float32),
            grid=grid,
            in_specs=[
                pl.BlockSpec((tile_p, _LANES), lambda i: (i, 0)),      # z: streamed over batch
                pl.BlockSpec((_LANES, _PACK), lambda i: (0, 0)),       # fused weight: VMEM-resident
                pl.BlockSpec(memory_space=pltpu.MemorySpace.SMEM),     # fused bias scalar in SMEM
            ],
            out_specs=pl.BlockSpec((tile_p, _PACK), lambda i: (i, 0)),
            compiler_params=pltpu.CompilerParams(
                dimension_semantics=("parallel",),   # batch grid shards across TCs (v7x)
                vmem_limit_bytes=int(vmem_limit),
            ),
        )(zp, w_packed, b_fused)
        outs.append(y_packed.reshape(b_main, 1))

    if b_main < B:
        # <4 leftover rows: tiny exact jnp fallback using the same fused affine.
        z_tail = z[b_main:].astype(jnp.float32)
        outs.append(jax.nn.sigmoid(z_tail @ w_fused + b_fused[None, :]))

    return outs[0] if len(outs) == 1 else jnp.concatenate(outs, axis=0)


if __name__ == "__main__":
    key = jax.random.PRNGKey(0)
    k_params, k_z = jax.random.split(key)
    k1, k2, k3, k4 = jax.random.split(k_params, 4)

    in1, out1, in2, out2 = 32, 64, 64, 1
    bound1 = 1.0 / jnp.sqrt(in1)
    bound2 = 1.0 / jnp.sqrt(in2)
    # PyTorch nn.Linear default init (U[-1/sqrt(fan_in), +1/sqrt(fan_in)]),
    # weights stored (in, out) == transposed nn.Linear weight.
    w1 = jax.random.uniform(k1, (in1, out1), jnp.float32, -bound1, bound1)
    b1 = jax.random.uniform(k2, (out1,), jnp.float32, -bound1, bound1)
    w2 = jax.random.uniform(k3, (in2, out2), jnp.float32, -bound2, bound2)
    b2 = jax.random.uniform(k4, (out2,), jnp.float32, -bound2, bound2)

    fwd = jax.jit(discriminator_vae_forward)

    # --- f32 path, small batch ---
    B = 64
    z = jax.random.normal(k_z, (B, in1), jnp.float32)
    y = jax.block_until_ready(fwd(z, w1, b1, w2, b2))
    y_ref = jax.nn.sigmoid((z @ w1 + b1) @ w2 + b2)   # two-stage reference (PyTorch math)
    assert y.shape == (B, 1)
    assert jnp.allclose(y, y_ref, atol=2e-3), "f32 path mismatch"

    # --- ragged batch (exercises partial trailing block + <4-row tail path) ---
    B2 = 10
    y2 = jax.block_until_ready(fwd(z[:B2], w1, b1, w2, b2))
    assert y2.shape == (B2, 1)
    assert jnp.allclose(y2, y_ref[:B2], atol=2e-3), "ragged path mismatch"

    # --- bf16 input path (recommended for large B: halves HBM read traffic) ---
    y_bf16 = jax.block_until_ready(fwd(z.astype(jnp.bfloat16), w1, b1, w2, b2))
    assert y_bf16.shape == (B, 1)
    assert jnp.allclose(y_bf16, y_ref, atol=2e-2), "bf16 path mismatch"

    print("KERNEL_OK")
</pallas_src>

<mosaic_0001>
module attributes {stable_mosaic.version = 11 : i64} {
  func.func @_disc_vae_kernel(%arg0: i32, %arg1: memref<16x128xf32, #tpu.memory_space<vmem>>, %arg2: memref<128x4xf32, #tpu.memory_space<vmem>>, %arg3: memref<1xf32, #tpu.memory_space<smem>>, %arg4: memref<16x4xf32, #tpu.memory_space<vmem>>) attributes {dimension_semantics = [#tpu.dimension_semantics<parallel>], iteration_bounds = array<i64: 1>, scalar_prefetch = 0 : i64, scratch_operands = 0 : i64, tpu.core_type = #tpu.core_type<tc>, window_params = [{transform_indices = @transform_0, window_bounds = array<i64: 16, 128>}, {pipeline_mode = #tpu.pipeline_mode<synchronous>, transform_indices = @transform_1, window_bounds = array<i64: 128, 4>}, {transform_indices = @transform_2, window_bounds = array<i64: 1>}, {transform_indices = @transform_3, window_bounds = array<i64: 16, 4>}]} {
    %c0 = arith.constant 0 : index
    %c0_0 = arith.constant 0 : index
    %0 = vector.load %arg1[%c0, %c0_0] : memref<16x128xf32, #tpu.memory_space<vmem>>, vector<16x128xf32>
    %c0_1 = arith.constant 0 : index
    %c0_2 = arith.constant 0 : index
    %1 = vector.load %arg2[%c0_1, %c0_2] : memref<128x4xf32, #tpu.memory_space<vmem>>, vector<128x4xf32>
    %cst = arith.constant dense<0.000000e+00> : vector<16x4xf32>
    %2 = tpu.matmul %0, %1, %cst {dimension_numbers = #tpu.dot_dimension_numbers<[1], [0], [0], [1], [0, 0, 1, 1], [], []>} : vector<16x128xf32>, vector<128x4xf32>, vector<16x4xf32> -> vector<16x4xf32>
    %c0_3 = arith.constant 0 : index
    %3 = memref.load %arg3[%c0_3] : memref<1xf32, #tpu.memory_space<smem>>
    %4 = vector.broadcast %3 : f32 to vector<16x4xf32>
    %5 = arith.addf %2, %4 : vector<16x4xf32>
    %cst_4 = arith.constant 0.000000e+00 : f32
    %6 = vector.broadcast %cst_4 : f32 to vector<16x4xf32>
    %7 = arith.subf %6, %5 : vector<16x4xf32>
    %8 = math.exp %7 : vector<16x4xf32>
    %cst_5 = arith.constant 1.000000e+00 : f32
    %9 = vector.broadcast %cst_5 : f32 to vector<16x4xf32>
    %10 = arith.addf %9, %8 : vector<16x4xf32>
    %11 = tpu.reciprocal %10 {approx = true} : vector<16x4xf32> -> vector<16x4xf32>
    %c0_6 = arith.constant 0 : index
    %c0_7 = arith.constant 0 : index
    %12 = vector.load %arg4[%c0_6, %c0_7] : memref<16x4xf32, #tpu.memory_space<vmem>>, vector<16x4xf32>
    tpu.vector_store %arg4[%c0_6, %c0_7], %11 {strides = array<i32>} : memref<16x4xf32, #tpu.memory_space<vmem>>, vector<16x4xf32>,
    return
  }
  func.func @transform_0(%arg0: i32) -> (i32, i32) {
    %c0_i32 = arith.constant 0 : i32
    %c0_i32_0 = arith.constant 0 : i32
    return %arg0, %c0_i32 : i32, i32
  }
  func.func @transform_1(%arg0: i32) -> (i32, i32) {
    %c0_i32 = arith.constant 0 : i32
    %c0_i32_0 = arith.constant 0 : i32
    %c0_i32_1 = arith.constant 0 : i32
    return %c0_i32, %c0_i32_0 : i32, i32
  }
  func.func @transform_2(%arg0: i32) -> i32 {
    %c0_i32 = arith.constant 0 : i32
    %c0_i32_0 = arith.constant 0 : i32
    return %c0_i32 : i32
  }
  func.func @transform_3(%arg0: i32) -> (i32, i32) {
    %c0_i32 = arith.constant 0 : i32
    %c0_i32_0 = arith.constant 0 : i32
    return %arg0, %c0_i32 : i32, i32
  }
}

</mosaic_0001>

<bundles_post_ra>
// kernel: discriminator_vae_forward.1
= control target key start
LH: loop header
LB: loop body
LE: loop exit
PB: predicated region body
PF: predicated region fallthrough
CT: control target
= control target key end

     0   :  { %vm68_vm0 = vcmask 31744   ;;  %s182_s1 = inlined_call_operand.vmem [shape: f32[128,4], index: 1, kind: input, shape index: {}]   ;;  %s183_s0 = inlined_call_operand.vmem [shape: f32[16,128], index: 0, kind: input, shape index: {}]   ;;  %s184_s2 = inlined_call_operand.<no memory space> [shape: f32[1], index: 2, kind: input, shape index: {}]   ;;  %s185_s3 = inlined_call_operand.vmem [shape: f32[16,4], index: 3, kind: output, shape index: {}]  }
   0x1   :  { %v32_v0 = vld [vmem:[%s182_s1 + $0x78] sm:$0xff]  ;;  %v31_v1 = vld [vmem:[%s182_s1 + $0x70] sm:$0xff]  ;;  %v30_v2 = vld [vmem:[%s182_s1 + $0x68] sm:$0xff]  ;;  %v34_v18 = vstv %s184_s2 }
   0x2   :  { %35 = vmatpush.msra.mxu0 %v32_v0  ;;  %75 = vmatpush.msra.mxu1 %v32_v0  ;;  %v29_v3 = vld [vmem:[%s182_s1 + $0x60] sm:$0xff]  ;;  %v28_v4 = vld [vmem:[%s182_s1 + $0x58] sm:$0xff]  ;;  %v27_v5 = vld [vmem:[%s182_s1 + $0x50] sm:$0xff] }
   0x3   :  { %v26_v6 = vld [vmem:[%s182_s1 + $0x48] sm:$0xff]  ;;  %v25_v7 = vld [vmem:[%s182_s1 + $0x40] sm:$0xff]  ;;  %v24_v8 = vld [vmem:[%s182_s1 + $0x38] sm:$0xff] }
   0x4   :  { %36 = vmatpush.msra.mxu0 %v31_v1  ;;  %76 = vmatpush.msra.mxu1 %v31_v1  ;;  %v23_v9 = vld [vmem:[%s182_s1 + $0x30] sm:$0xff]  ;;  %v22_v10 = vld [vmem:[%s182_s1 + $0x28] sm:$0xff]  ;;  %v21_v11 = vld [vmem:[%s182_s1 + $0x20] sm:$0xff] }
   0x5   :  { %v20_v12 = vld [vmem:[%s182_s1 + $0x18] sm:$0xff]  ;;  %v19_v13 = vld [vmem:[%s182_s1 + $0x10] sm:$0xff]  ;;  %v18_v14 = vld [vmem:[%s182_s1 + $0x8] sm:$0xff] }
   0x6   :  { %37 = vmatpush.msra.mxu0 %v30_v2  ;;  %77 = vmatpush.msra.mxu1 %v30_v2  ;;  %v17_v15 = vld [vmem:[%s182_s1] sm:$0xff]  ;;  %v16_v17 = vld [vmem:[%s183_s0 + $0x8] sm:$0xff] }
   0x7   :  { %v15_v16 = vld [vmem:[%s183_s0] sm:$0xff] }
   0x8   :  { %38 = vmatpush.msra.mxu0 %v29_v3  ;;  %78 = vmatpush.msra.mxu1 %v29_v3 }
   0xa   :  { %39 = vmatpush.msra.mxu0 %v28_v4  ;;  %79 = vmatpush.msra.mxu1 %v28_v4 }
   0xc   :  { %40 = vmatpush.msra.mxu0 %v27_v5  ;;  %80 = vmatpush.msra.mxu1 %v27_v5 }
   0xe   :  { %41 = vmatpush.msra.mxu0 %v26_v6  ;;  %81 = vmatpush.msra.mxu1 %v26_v6 }
  0x10   :  { %42 = vmatpush.msra.mxu0 %v25_v7  ;;  %82 = vmatpush.msra.mxu1 %v25_v7 }
  0x12   :  { %43 = vmatpush.msra.mxu0 %v24_v8  ;;  %83 = vmatpush.msra.mxu1 %v24_v8 }
  0x14   :  { %44 = vmatpush.msra.mxu0 %v23_v9  ;;  %84 = vmatpush.msra.mxu1 %v23_v9 }
  0x16   :  { %45 = vmatpush.msra.mxu0 %v22_v10  ;;  %85 = vmatpush.msra.mxu1 %v22_v10 }
  0x18   :  { %46 = vmatpush.msra.mxu0 %v21_v11  ;;  %86 = vmatpush.msra.mxu1 %v21_v11 }
  0x1a   :  { %47 = vmatpush.msra.mxu0 %v20_v12  ;;  %87 = vmatpush.msra.mxu1 %v20_v12 }
  0x1c   :  { %48 = vmatpush.msra.mxu0 %v19_v13  ;;  %88 = vmatpush.msra.mxu1 %v19_v13 }
  0x1e   :  { %49 = vmatpush.msra.mxu0 %v18_v14  ;;  %89 = vmatpush.msra.mxu1 %v18_v14 }
  0x20   :  { %50 = vmatpush.msra.mxu0 %v17_v15  ;;  %90 = vmatpush.msra.mxu1 %v17_v15 }
  0x21   :  { %51 = vmatmul.f32.vlgmr.msra.gmra.mxu0 %v15_v16  ;;  %54 = vmatmul.f32.vlgmr.msra.gmra.mxu1 %v16_v17 }
  0x9e   :  { %v52_v19 = vpop.f32.mrf.mxu0  ;;  %v55_v20 = vpop.f32.mrf.mxu1 }
  0x9f   :  { %v53_v21 = vadd.f32 %v52_v19, %v34_v18  ;;  %v56_v22 = vadd.f32 %v55_v20, %v34_v18 }
  0xa1   :  { %v58_v23 = vsub.f32 0.0, %v53_v21  ;;  %v59_v24 = vsub.f32 0.0, %v56_v22 }
  0xa3   :  { %v60_v25 = vmul.f32 1.442695, %v58_v23  ;;  %v62_v26 = vmul.f32 1.442695, %v59_v24 }
  0xa5   :  { %91 = vpow2.f32 %v60_v25 }
  0xa6   :  { %93 = vpow2.f32 %v62_v26 }
  0xab   :  { %v92_v27 = vpop.eup %91 }
  0xac   :  { %v94_v28 = vpop.eup %93  ;;  %v64_v29 = vadd.f32 1.0, %v92_v27 }
  0xad   :  { %v65_v30 = vadd.f32 1.0, %v94_v28 }
  0xae   :  { %95 = vrcp.f32 %v64_v29 }
  0xaf   :  { %97 = vrcp.f32 %v65_v30 }
  0xb4   :  { %v96_v31 = vpop.eup %95 }
  0xb5   :  { %v98_v32 = vpop.eup %97  ;;  %69 = vst.msk [vmem:[%s185_s3] sm:$0xff] %vm68_vm0, %v96_v31 }
  0xb6   :  { %70 = vst.msk [vmem:[%s185_s3 + $0x8] sm:$0xff] %vm68_vm0, %v98_v32 }

</bundles_post_ra>
